<compile_context>
chip_gen: v7x
topology: tpu7x:2x2x1
jax: 0.10.0
libtpu: 0.0.40
codegen_flags: <defaults>
</compile_context>

<pallas_src>
import math
import jax
import jax.numpy as jnp
from jax.experimental import pallas as pl
from jax.experimental.pallas import tpu as pltpu

# ---- problem sizes (small, consistent with the module) ----------------------
B, S, E = 2, 8, 32          # batch, seq, embedding_width
H, DH, M = 4, 8, 16         # PIMU heads, head dim, injected-memory slots (H*DH == E)
C = 10                      # total_samples (classifier width)
HM = H * M                  # packed score width
LN_EPS = 1e-5               # torch.nn.LayerNorm default eps
SCALE = 1.0 / math.sqrt(DH)

# ---- tiling ------------------------------------------------------------------
TB = B                      # examples per grid tile (raise to >=16 for throughput runs)
TS = TB * S                 # activation rows per grid tile
TBP = ((TB + 7) // 8) * 8   # padded per-tile output rows (sublane multiple of 8)
OUT_LANES = 128             # lane-dense output slab width

# ---- parameter-slab row offsets (all params start at lane 0) -----------------
R_WQ = 0                    # (E, E)   query projection
R_KT = 32                   # (E, HM)  block-diag K^T, SCALE pre-folded
R_WOV = 64                  # (HM, E)  V bank folded into output projection
R_ONES = 128                # (HM, HM) block-ones for segmented softmax denom
R_WF = 192                  # (E, C)   final Linear weight
R_GAMMA = 224               # (1, E)
R_BETA = 225                # (1, E)
R_BF = 226                  # (1, C)
R_AVG = 232                 # (TBP, TS) per-example sequence-averaging matrix (8-aligned)
P_ROWS = R_AVG + TBP        # 240
P_LANES = 128


def piu_kernel(p_ref, x_ref, yoh_ref, out_ref):
    """One grid step: TB examples (TS rows). Weight slab is resident across steps."""
    # ---- carve parameters out of the packed slab (static slices) ------------
    gamma = p_ref[R_GAMMA:R_GAMMA + 1, 0:E]            # (1, E)
    beta = p_ref[R_BETA:R_BETA + 1, 0:E]               # (1, E)
    wq = p_ref[R_WQ:R_WQ + E, 0:E]                     # (E, E)
    ktbd = p_ref[R_KT:R_KT + E, 0:HM]                  # (E, HM), scale folded in
    wov = p_ref[R_WOV:R_WOV + HM, 0:E]                 # (HM, E)
    bones = p_ref[R_ONES:R_ONES + HM, 0:HM]            # (HM, HM)
    wf = p_ref[R_WF:R_WF + E, 0:C]                     # (E, C)
    bf = p_ref[R_BF:R_BF + 1, 0:C]                     # (1, C)
    avg = p_ref[R_AVG:R_AVG + TBP, 0:TS]               # (TBP, TS), pad rows are zero

    x = x_ref[...]                                     # (TS, E)

    # ---- LayerNorm over the embedding axis -----------------------------------
    mu = jnp.mean(x, axis=-1, keepdims=True)
    var = jnp.mean((x - mu) ** 2, axis=-1, keepdims=True)
    xn = (x - mu) * jax.lax.rsqrt(var + LN_EPS) * gamma + beta       # (TS, E)

    # ---- PIMU: packed multi-head attention against learned K/V banks ---------
    q = jnp.dot(xn, wq, preferred_element_type=jnp.float32)          # (TS, E)
    s = jnp.dot(q, ktbd, preferred_element_type=jnp.float32)         # (TS, HM)
    # global row-max is a per-row constant -> per-head softmax unchanged
    s = s - jnp.max(s, axis=-1, keepdims=True)
    p = jnp.exp(s)                                                   # (TS, HM)
    # per-head sums broadcast back to every slot of that head, in one matmul
    denom = jnp.dot(p, bones, preferred_element_type=jnp.float32)    # (TS, HM)
    p = p / jnp.maximum(denom, 1e-30)                 # exact divide, NaN-safe clamp
    attn = jnp.dot(p, wov, preferred_element_type=jnp.float32)       # (TS, E)

    # ---- Dropout (eval-mode identity) + residual ------------------------------
    y = attn + xn                                                    # (TS, E)

    # ---- per-example sequence mean FIRST, then the final Linear ---------------
    ybar = jnp.dot(avg, y, preferred_element_type=jnp.float32)       # (TBP, E)
    logits = jnp.dot(ybar, wf, preferred_element_type=jnp.float32) + bf   # (TBP, C)

    # ---- per-example cross-entropy (stable log-sum-exp) -----------------------
    mx = jnp.max(logits, axis=-1, keepdims=True)
    lse = mx + jnp.log(jnp.sum(jnp.exp(logits - mx), axis=-1, keepdims=True))
    tgt = jnp.sum(yoh_ref[...] * logits, axis=-1, keepdims=True)     # (TBP, 1)
    loss_per_ex = lse - tgt                                          # (TBP, 1)

    # ---- single unmasked full-tile store: [loss, logits, pad] -----------------
    pad = jnp.zeros((TBP, OUT_LANES - 1 - C), jnp.float32)
    out_ref[...] = jnp.concatenate([loss_per_ex, logits, pad], axis=-1)


def pack_params(params):
    """One-time packing of all weights into a single (P_ROWS, 128) VMEM slab."""
    gamma, beta, wq, kmem, vmem, wo, wf, bf = params

    # Block-diagonal Key^T with the attention scale folded in: (E, HM)
    kt_bd = jax.scipy.linalg.block_diag(*[kmem[h].T for h in range(H)]) * SCALE
    # Fold the Value bank into the head-concat output projection: (HM, E)
    w_ov = jnp.einsum('hmd,hde->hme', vmem, wo.reshape(H, DH, E)).reshape(HM, E)
    # Block-ones matrix for the segmented softmax denominator
    block_ones = jnp.kron(jnp.eye(H, dtype=jnp.float32), jnp.ones((M, M), jnp.float32))
    # Per-example sequence-averaging matrix for one tile (pad rows stay zero)
    avg = jnp.kron(jnp.eye(TB, dtype=jnp.float32),
                   jnp.full((1, S), 1.0 / S, jnp.float32))           # (TB, TS)

    slab = jnp.zeros((P_ROWS, P_LANES), jnp.float32)
    slab = slab.at[R_WQ:R_WQ + E, 0:E].set(wq)
    slab = slab.at[R_KT:R_KT + E, 0:HM].set(kt_bd)
    slab = slab.at[R_WOV:R_WOV + HM, 0:E].set(w_ov)
    slab = slab.at[R_ONES:R_ONES + HM, 0:HM].set(block_ones)
    slab = slab.at[R_WF:R_WF + E, 0:C].set(wf)
    slab = slab.at[R_GAMMA, 0:E].set(gamma)
    slab = slab.at[R_BETA, 0:E].set(beta)
    slab = slab.at[R_BF, 0:C].set(bf)
    slab = slab.at[R_AVG:R_AVG + TB, 0:TS].set(avg)
    return slab


def piu_forward(x, labels, pslab):
    """Per-call path: reshape x, one-hot labels, one gridded pallas_call."""
    b = x.shape[0]
    n_tiles = b // TB
    x_flat = x.reshape(b * S, E)

    yoh = jax.nn.one_hot(labels, C, dtype=jnp.float32).reshape(n_tiles, TB, C)
    yoh = jnp.pad(yoh, ((0, 0), (0, TBP - TB), (0, 0))).reshape(n_tiles * TBP, C)

    out = pl.pallas_call(
        piu_kernel,
        out_shape=jax.ShapeDtypeStruct((n_tiles * TBP, OUT_LANES), jnp.float32),
        grid=(n_tiles,),
        in_specs=[
            pl.BlockSpec((P_ROWS, P_LANES), lambda i: (0, 0)),   # resident weight slab
            pl.BlockSpec((TS, E), lambda i: (i, 0)),             # activation rows
            pl.BlockSpec((TBP, C), lambda i: (i, 0)),            # one-hot labels
        ],
        out_specs=pl.BlockSpec((TBP, OUT_LANES), lambda i: (i, 0)),
        compiler_params=pltpu.CompilerParams(
            dimension_semantics=("parallel",)),                  # v7x: 2 TCs share tiles
    )(pslab, x_flat, yoh)

    out = out.reshape(n_tiles, TBP, OUT_LANES)[:, :TB, :].reshape(b, OUT_LANES)
    loss = jnp.mean(out[:, 0])                    # CrossEntropyLoss reduction='mean'
    logits = out[:, 1:1 + C]                      # (b, C)
    return loss, logits


def init_params(key):
    """Deterministic synthetic parameters (shapes implied by the module's __init__)."""
    ks = jax.random.split(key, 6)
    gamma = jnp.ones((E,), jnp.float32)               # LayerNorm weight
    beta = jnp.zeros((E,), jnp.float32)               # LayerNorm bias
    wq = 0.08 * jax.random.normal(ks[0], (E, E), jnp.float32)        # PIMU query proj
    kmem = 0.08 * jax.random.normal(ks[1], (H, M, DH), jnp.float32)  # learned Key bank
    vmem = 0.08 * jax.random.normal(ks[2], (H, M, DH), jnp.float32)  # learned Value bank
    wo = 0.08 * jax.random.normal(ks[3], (E, E), jnp.float32)        # PIMU output proj
    wf = 0.08 * jax.random.normal(ks[4], (E, C), jnp.float32)        # final Linear weight
    bf = 0.01 * jax.random.normal(ks[5], (C,), jnp.float32)          # final Linear bias
    return gamma, beta, wq, kmem, vmem, wo, wf, bf


if __name__ == "__main__":
    root = jax.random.PRNGKey(0)
    kx, kl, kp = jax.random.split(root, 3)

    x = jax.random.normal(kx, (B, S, E), jnp.float32)
    labels = jax.random.randint(kl, (B,), 0, C)
    params = init_params(kp)

    pslab = pack_params(params)                  # one-time packing, outside hot path
    loss, logits = jax.jit(piu_forward)(x, labels, pslab)
    loss = jax.block_until_ready(loss)
    logits = jax.block_until_ready(logits)

    assert loss.shape == () and bool(jnp.isfinite(loss))
    assert logits.shape == (B, C)
    print("KERNEL_OK")
</pallas_src>

<mosaic_0001>
module attributes {stable_mosaic.version = 11 : i64} {
  func.func @piu_kernel(%arg0: i32, %arg1: memref<240x128xf32, #tpu.memory_space<vmem>>, %arg2: memref<16x32xf32, #tpu.memory_space<vmem>>, %arg3: memref<8x10xf32, #tpu.memory_space<vmem>>, %arg4: memref<8x128xf32, #tpu.memory_space<vmem>>) attributes {dimension_semantics = [#tpu.dimension_semantics<parallel>], iteration_bounds = array<i64: 1>, scalar_prefetch = 0 : i64, scratch_operands = 0 : i64, tpu.core_type = #tpu.core_type<tc>, window_params = [{pipeline_mode = #tpu.pipeline_mode<synchronous>, transform_indices = @transform_0, window_bounds = array<i64: 240, 128>}, {transform_indices = @transform_1, window_bounds = array<i64: 16, 32>}, {transform_indices = @transform_2, window_bounds = array<i64: 8, 10>}, {transform_indices = @transform_3, window_bounds = array<i64: 8, 128>}]} {
    %c224 = arith.constant 224 : index
    %c0 = arith.constant 0 : index
    %0 = vector.load %arg1[%c224, %c0] : memref<240x128xf32, #tpu.memory_space<vmem>>, vector<1x32xf32>
    %c225 = arith.constant 225 : index
    %c0_0 = arith.constant 0 : index
    %1 = vector.load %arg1[%c225, %c0_0] : memref<240x128xf32, #tpu.memory_space<vmem>>, vector<1x32xf32>
    %c0_1 = arith.constant 0 : index
    %c0_2 = arith.constant 0 : index
    %2 = vector.load %arg1[%c0_1, %c0_2] : memref<240x128xf32, #tpu.memory_space<vmem>>, vector<32x32xf32>
    %c32 = arith.constant 32 : index
    %c0_3 = arith.constant 0 : index
    %3 = vector.load %arg1[%c32, %c0_3] : memref<240x128xf32, #tpu.memory_space<vmem>>, vector<32x64xf32>
    %c64 = arith.constant 64 : index
    %c0_4 = arith.constant 0 : index
    %4 = vector.load %arg1[%c64, %c0_4] : memref<240x128xf32, #tpu.memory_space<vmem>>, vector<64x32xf32>
    %c128 = arith.constant 128 : index
    %c0_5 = arith.constant 0 : index
    %5 = vector.load %arg1[%c128, %c0_5] : memref<240x128xf32, #tpu.memory_space<vmem>>, vector<64x64xf32>
    %c192 = arith.constant 192 : index
    %c0_6 = arith.constant 0 : index
    %6 = vector.load %arg1[%c192, %c0_6] : memref<240x128xf32, #tpu.memory_space<vmem>>, vector<32x10xf32>
    %c226 = arith.constant 226 : index
    %c0_7 = arith.constant 0 : index
    %7 = vector.load %arg1[%c226, %c0_7] : memref<240x128xf32, #tpu.memory_space<vmem>>, vector<1x10xf32>
    %c232 = arith.constant 232 : index
    %c0_8 = arith.constant 0 : index
    %8 = vector.load %arg1[%c232, %c0_8] : memref<240x128xf32, #tpu.memory_space<vmem>>, vector<8x16xf32>
    %c0_9 = arith.constant 0 : index
    %c0_10 = arith.constant 0 : index
    %9 = vector.load %arg2[%c0_9, %c0_10] : memref<16x32xf32, #tpu.memory_space<vmem>>, vector<16x32xf32>
    %cst = arith.constant dense<0.000000e+00> : vector<16xf32>
    %10 = vector.multi_reduction <add>, %9, %cst [1] : vector<16x32xf32> to vector<16xf32>
    %11 = vector.shape_cast %10 : vector<16xf32> to vector<16x1xf32>
    %cst_11 = arith.constant 3.200000e+01 : f32
    %12 = vector.broadcast %cst_11 : f32 to vector<16x1xf32>
    %13 = arith.divf %11, %12 : vector<16x1xf32>
    %14 = vector.broadcast %13 : vector<16x1xf32> to vector<16x32xf32>
    %15 = arith.subf %9, %14 : vector<16x32xf32>
    %16 = arith.mulf %15, %15 : vector<16x32xf32>
    %cst_12 = arith.constant dense<0.000000e+00> : vector<16xf32>
    %17 = vector.multi_reduction <add>, %16, %cst_12 [1] : vector<16x32xf32> to vector<16xf32>
    %18 = vector.shape_cast %17 : vector<16xf32> to vector<16x1xf32>
    %cst_13 = arith.constant 3.200000e+01 : f32
    %19 = vector.broadcast %cst_13 : f32 to vector<16x1xf32>
    %20 = arith.divf %18, %19 : vector<16x1xf32>
    %21 = vector.broadcast %13 : vector<16x1xf32> to vector<16x32xf32>
    %22 = arith.subf %9, %21 : vector<16x32xf32>
    %cst_14 = arith.constant 9.99999974E-6 : f32
    %23 = vector.broadcast %cst_14 : f32 to vector<16x1xf32>
    %24 = arith.addf %20, %23 : vector<16x1xf32>
    %25 = math.rsqrt %24 : vector<16x1xf32>
    %26 = vector.broadcast %25 : vector<16x1xf32> to vector<16x32xf32>
    %27 = arith.mulf %22, %26 : vector<16x32xf32>
    %28 = vector.broadcast %0 : vector<1x32xf32> to vector<16x32xf32>
    %29 = arith.mulf %27, %28 : vector<16x32xf32>
    %30 = vector.broadcast %1 : vector<1x32xf32> to vector<16x32xf32>
    %31 = arith.addf %29, %30 : vector<16x32xf32>
    %cst_15 = arith.constant dense<0.000000e+00> : vector<16x32xf32>
    %32 = tpu.matmul %31, %2, %cst_15 {dimension_numbers = #tpu.dot_dimension_numbers<[1], [0], [0], [1], [0, 0, 1, 1], [], []>} : vector<16x32xf32>, vector<32x32xf32>, vector<16x32xf32> -> vector<16x32xf32>
    %cst_16 = arith.constant dense<0.000000e+00> : vector<16x64xf32>
    %33 = tpu.matmul %32, %3, %cst_16 {dimension_numbers = #tpu.dot_dimension_numbers<[1], [0], [0], [1], [0, 0, 1, 1], [], []>} : vector<16x32xf32>, vector<32x64xf32>, vector<16x64xf32> -> vector<16x64xf32>
    %cst_17 = arith.constant dense<0xFF800000> : vector<16xf32>
    %34 = vector.multi_reduction <maximumf>, %33, %cst_17 [1] : vector<16x64xf32> to vector<16xf32>
    %35 = vector.shape_cast %34 : vector<16xf32> to vector<16x1xf32>
    %36 = vector.broadcast %35 : vector<16x1xf32> to vector<16x64xf32>
    %37 = arith.subf %33, %36 : vector<16x64xf32>
    %38 = math.exp %37 : vector<16x64xf32>
    %cst_18 = arith.constant dense<0.000000e+00> : vector<16x64xf32>
    %39 = tpu.matmul %38, %5, %cst_18 {dimension_numbers = #tpu.dot_dimension_numbers<[1], [0], [0], [1], [0, 0, 1, 1], [], []>} : vector<16x64xf32>, vector<64x64xf32>, vector<16x64xf32> -> vector<16x64xf32>
    %cst_19 = arith.constant 1.000000e-30 : f32
    %40 = vector.broadcast %cst_19 : f32 to vector<16x64xf32>
    %41 = arith.maximumf %39, %40 : vector<16x64xf32>
    %42 = arith.divf %38, %41 : vector<16x64xf32>
    %cst_20 = arith.constant dense<0.000000e+00> : vector<16x32xf32>
    %43 = tpu.matmul %42, %4, %cst_20 {dimension_numbers = #tpu.dot_dimension_numbers<[1], [0], [0], [1], [0, 0, 1, 1], [], []>} : vector<16x64xf32>, vector<64x32xf32>, vector<16x32xf32> -> vector<16x32xf32>
    %44 = arith.addf %43, %31 : vector<16x32xf32>
    %cst_21 = arith.constant dense<0.000000e+00> : vector<8x32xf32>
    %45 = tpu.matmul %8, %44, %cst_21 {dimension_numbers = #tpu.dot_dimension_numbers<[1], [0], [0], [1], [0, 0, 1, 1], [], []>} : vector<8x16xf32>, vector<16x32xf32>, vector<8x32xf32> -> vector<8x32xf32>
    %cst_22 = arith.constant dense<0.000000e+00> : vector<8x10xf32>
    %46 = tpu.matmul %45, %6, %cst_22 {dimension_numbers = #tpu.dot_dimension_numbers<[1], [0], [0], [1], [0, 0, 1, 1], [], []>} : vector<8x32xf32>, vector<32x10xf32>, vector<8x10xf32> -> vector<8x10xf32>
    %47 = vector.broadcast %7 : vector<1x10xf32> to vector<8x10xf32>
    %48 = arith.addf %46, %47 : vector<8x10xf32>
    %cst_23 = arith.constant dense<0xFF800000> : vector<8xf32>
    %49 = vector.multi_reduction <maximumf>, %48, %cst_23 [1] : vector<8x10xf32> to vector<8xf32>
    %50 = vector.shape_cast %49 : vector<8xf32> to vector<8x1xf32>
    %51 = vector.broadcast %50 : vector<8x1xf32> to vector<8x10xf32>
    %52 = arith.subf %48, %51 : vector<8x10xf32>
    %53 = math.exp %52 : vector<8x10xf32>
    %cst_24 = arith.constant dense<0.000000e+00> : vector<8xf32>
    %54 = vector.multi_reduction <add>, %53, %cst_24 [1] : vector<8x10xf32> to vector<8xf32>
    %55 = vector.shape_cast %54 : vector<8xf32> to vector<8x1xf32>
    %56 = math.log %55 : vector<8x1xf32>
    %57 = arith.addf %50, %56 : vector<8x1xf32>
    %c0_25 = arith.constant 0 : index
    %c0_26 = arith.constant 0 : index
    %58 = vector.load %arg3[%c0_25, %c0_26] : memref<8x10xf32, #tpu.memory_space<vmem>>, vector<8x10xf32>
    %59 = arith.mulf %58, %48 : vector<8x10xf32>
    %cst_27 = arith.constant dense<0.000000e+00> : vector<8xf32>
    %60 = vector.multi_reduction <add>, %59, %cst_27 [1] : vector<8x10xf32> to vector<8xf32>
    %61 = vector.shape_cast %60 : vector<8xf32> to vector<8x1xf32>
    %62 = arith.subf %57, %61 : vector<8x1xf32>
    %cst_28 = arith.constant 0.000000e+00 : f32
    %63 = vector.broadcast %cst_28 : f32 to vector<8x117xf32>
    %64 = tpu.concatenate %62, %48, %63 in 1 : vector<8x1xf32>, vector<8x10xf32>, vector<8x117xf32> -> vector<8x128xf32>
    %c0_29 = arith.constant 0 : index
    %c0_30 = arith.constant 0 : index
    %65 = vector.load %arg4[%c0_29, %c0_30] : memref<8x128xf32, #tpu.memory_space<vmem>>, vector<8x128xf32>
    tpu.vector_store %arg4[%c0_29, %c0_30], %64 {strides = array<i32>} : memref<8x128xf32, #tpu.memory_space<vmem>>, vector<8x128xf32>,
    return
  }
  func.func @transform_0(%arg0: i32) -> (i32, i32) {
    %c0_i32 = arith.constant 0 : i32
    %c0_i32_0 = arith.constant 0 : i32
    %c0_i32_1 = arith.constant 0 : i32
    return %c0_i32, %c0_i32_0 : i32, i32
  }
  func.func @transform_1(%arg0: i32) -> (i32, i32) {
    %c0_i32 = arith.constant 0 : i32
    %c0_i32_0 = arith.constant 0 : i32
    return %arg0, %c0_i32 : i32, i32
  }
  func.func @transform_2(%arg0: i32) -> (i32, i32) {
    %c0_i32 = arith.constant 0 : i32
    %c0_i32_0 = arith.constant 0 : i32
    return %arg0, %c0_i32 : i32, i32
  }
  func.func @transform_3(%arg0: i32) -> (i32, i32) {
    %c0_i32 = arith.constant 0 : i32
    %c0_i32_0 = arith.constant 0 : i32
    return %arg0, %c0_i32 : i32, i32
  }
}

</mosaic_0001>

<bundles_post_ra>
// kernel: piu_forward.1
= control target key start
LH: loop header
LB: loop body
LE: loop exit
PB: predicated region body
PF: predicated region fallthrough
CT: control target
= control target key end

     0   :  { %8 = vsyncpa [#allocation3], 0  ;;  %s864_s12 = smov [#allocation2]   ;;  %s938_s0 = inlined_call_operand.hbm [shape: f32[240,128], index: 0, kind: input, shape index: {}]   ;;  %s939_s1 = inlined_call_operand.vmem [shape: f32[16,32], index: 1, kind: input, shape index: {}]   ;;  %s940_s2 = inlined_call_operand.vmem [shape: f32[8,10], index: 2, kind: input, shape index: {}]   ;;  %s941_s3 = inlined_call_operand.vmem [shape: f32[8,128], index: 3, kind: output, shape index: {}]  }
   0x1   :  { %s14_s13 = sshll.u32 %s864_s12, 4  ;;  %s840_s16 = scalar_lea.hbm %s938_s0, 3840  ;;  %s15_s13 = int_to_ptr.vmem [resolvable:$true] %s14_s13 }
   0x2   :  { %p841_p0 = scmp.ne.s32.totalorder %s938_s0, %s840_s16  ;;  %p844_p1 = scmp.lt.u32.totalorder %s840_s16, %s938_s0 }
   0x4   :  { %p846_p2 = pnand %p844_p1, %p841_p0 }
   0x6   :  { %849 = shalt.err (!%p846_p2)
}
   0x7   :  { %s850_s21 = scalar_lea.vmem %s15_s13, 3840  ;;  %p855_p4 = scmp.lt.s32.totalorder %s15_s13, %s15_s13 }
   0x8   :  { %p851_p3 = scmp.ne.s32.totalorder %s15_s13, %s850_s21  ;;  %p856_p5 = scmp.lt.s32.totalorder %s850_s21, %s850_s21 }
   0xa   :  { %p857_p6 = por %p856_p5, %p855_p4 }
   0xc   :  { %p858_p7 = pnand %p857_p6, %p851_p3 }
   0xe   :  { %861 = shalt.err (!%p858_p7)
}
   0xf   :  { %s865_s22 = smov 128   ;;  %s866_s23 = smov 8  }
  0x10   :  { %20 = dma.hbm_to_vmem [thread:$0]  %s938_s0, 3840, %s15_s13, [#allocation3], %s865_s22, %s865_s22, %s866_s23  }
  0x11   :  { %862 = dma.done.wait [#allocation3], 3840  }
  0x12   :  { %863 = vsyncadd [#allocation3], 4294963456  ;;  %vm62_vm0 = vcmask 261120   ;;  %v60_v0 = vld [vmem:[%s939_s1] sm:$0xff]  ;;  %v61_v1 = vld [vmem:[%s939_s1 + $0x8] sm:$0xff]  ;;  %vm264_vm1 = vcmask 523264  }
  0x13   :  { %v63_v2 = vsel %vm62_vm0, %v60_v0, 0.0  ;;  %v66_v3 = vsel %vm62_vm0, %v61_v1, 0.0  ;;  %v30_v14 = vld [vmem:[#allocation2] sm:$0xff]  ;;  %v31_v15 = vld [vmem:[#allocation2 + $0x8] sm:$0xff]  ;;  %v32_v16 = vld [vmem:[#allocation2 + $0x10] sm:$0xff]  ;;  %vm868_vm2 = vmmov 0  }
  0x14   :  { %64 = vadd.xlane.f32.xlu0 %v63_v2  ;;  %v760_v17 = vpack.c.bf16 %v31_v15, %v30_v14  ;;  %v33_v18 = vld [vmem:[#allocation2 + $0x18] sm:$0xff]  ;;  %v34_v20 = vld [vmem:[#allocation2 + $0x20] sm:$0xff]  ;;  %v35_v21 = vld [vmem:[#allocation2 + $0x28] sm:$0xff]  ;;  %vm445_vm3 = vcmask 130048   ;;  %vm596_vm4 = vcmask 80896   ;;  %s870_s30 = smov 1  }
  0x15   :  { %v764_v19 = vpack.c.bf16 %v33_v18, %v32_v16  ;;  %v36_v22 = vld [vmem:[#allocation2 + $0x30] sm:$0xff]  ;;  %v768_v23 = vpack.c.bf16 %v35_v21, %v34_v20  ;;  %v37_v24 = vld [vmem:[#allocation2 + $0x38] sm:$0xff]  ;;  %v629_v33 = vld [vmem:[#allocation2 + $0xe0] ss:$0 sm:$0xff]  ;;  %vm619_vm5 = vcmask 7168   ;;  %vm621_vm6 = vcmask 89088  }
  0x16   :  { %761 = vmatprep.subr.bf16.mxu0 %v760_v17  ;;  %v772_v25 = vpack.c.bf16 %v37_v24, %v36_v22  ;;  %v630_v35 = vld [vmem:[#allocation2 + $0xe1] ss:$0 sm:$0xff]  ;;  %v47_v49 = vld [vmem:[#allocation2 + $0x88] sm:$0xff]  ;;  %v48_v51 = vld [vmem:[#allocation2 + $0x90] sm:$0xff]  ;;  %v867_v24 = vmov 0.0|0.0  }
  0x17   :  { %763 = vmatpush3.bf16.msra.mxu0 %v760_v17  ;;  %769 = vmatprep.subr.bf16.mxu1 %v768_v23  ;;  %v46_v48 = vld [vmem:[#allocation2 + $0x80] sm:$0xff]  ;;  %v49_v52 = vld [vmem:[#allocation2 + $0x98] sm:$0xff]  ;;  %v51_v55 = vld [vmem:[#allocation2 + $0xa8] sm:$0xff] }
  0x18   :  { %67 = vadd.xlane.f32.xlu0 %v66_v3  ;;  %765 = vmatprep.subr.bf16.mxu0 %v764_v19  ;;  %v776_v50 = vpack.c.bf16 %v47_v49, %v46_v48  ;;  %v780_v53 = vpack.c.bf16 %v49_v52, %v48_v51  ;;  %v50_v54 = vld [vmem:[#allocation2 + $0xa0] sm:$0xff]  ;;  %v52_v56 = vld [vmem:[#allocation2 + $0xb0] sm:$0xff]  ;;  %v53_v58 = vld [vmem:[#allocation2 + $0xb8] sm:$0xff] }
  0x19   :  { %771 = vmatpush3.bf16.msra.mxu1 %v768_v23  ;;  %v784_v57 = vpack.c.bf16 %v51_v55, %v50_v54  ;;  %v788_v59 = vpack.c.bf16 %v53_v58, %v52_v56  ;;  %v45_v14 = vld [vmem:[#allocation2 + $0x78] sm:$0xff] }
  0x1a   :  { %773 = vmatprep.subr.bf16.mxu1 %v772_v25 }
  0x1b   :  { %767 = vmatpush3.bf16.msra.mxu0 %v764_v19 }
  0x1c   :  { %777 = vmatprep.subr.bf16.mxu0 %v776_v50 }
  0x1d   :  { %775 = vmatpush3.bf16.msra.mxu1 %v772_v25  ;;  %v869_v25 = vmov 0.0  }
  0xa1   :  { %v65_v4 = vpop.xlane.xlu0 %64 }
  0xa2   :  { %v70_v5 = vmul.f32 0.03125, %v65_v4  ;;  %v38_v4 = vld [vmem:[#allocation2 + $0x40] sm:$0xff] }
  0xa4   :  { %v72_v6 = vsub.f32 %v60_v0, %v70_v5  ;;  %v39_v5 = vld [vmem:[#allocation2 + $0x48] sm:$0xff] }
  0xa5   :  { %v68_v7 = vpop.xlane.xlu0 %67 }
  0xa6   :  { %v71_v8 = vmul.f32 0.03125, %v68_v7  ;;  %v74_v9 = vmul.f32 %v72_v6, %v72_v6  ;;  %v40_v7 = vld [vmem:[#allocation2 + $0x50] sm:$0xff] }
  0xa8   :  { %v73_v10 = vsub.f32 %v61_v1, %v71_v8  ;;  %v76_v11 = vsel %vm62_vm0, %v74_v9, 0.0  ;;  %v41_v8 = vld [vmem:[#allocation2 + $0x58] sm:$0xff] }
  0xa9   :  { %77 = vadd.xlane.f32.xlu1 %v76_v11  ;;  %v796_v9 = vpack.c.bf16 %v41_v8, %v40_v7  ;;  %v43_v11 = vld [vmem:[#allocation2 + $0x68] sm:$0xff] }
  0xaa   :  { %v75_v12 = vmul.f32 %v73_v10, %v73_v10 }
  0xac   :  { %v79_v13 = vsel %vm62_vm0, %v75_v12, 0.0 }
  0xad   :  { %80 = vadd.xlane.f32.xlu1 %v79_v13  ;;  %v44_v13 = vld [vmem:[#allocation2 + $0x70] sm:$0xff] }
  0xae   :  { %v804_v15 = vpack.c.bf16 %v45_v14, %v44_v13 }
 0x136   :  { %v78_v26 = vpop.xlane.xlu1 %77 }
 0x137   :  { %v82_v27 = vmul.f32 0.03125, %v78_v26  ;;  %v54_v26 = vld [vmem:[#allocation2 + $0xc0] sm:$0xff] }
 0x139   :  { %v84_v28 = vadd.f32 1e-05, %v82_v27  ;;  %v55_v27 = vld [vmem:[#allocation2 + $0xc8] sm:$0xff] }
 0x13a   :  { %v81_v29 = vpop.xlane.xlu1 %80 }
 0x13b   :  { %824 = vrsqrt.f32 %v84_v28  ;;  %v83_v30 = vmul.f32 0.03125, %v81_v29  ;;  %v56_v28 = vld [vmem:[#allocation2 + $0xd0] sm:$0xff]  ;;  %v812_v29 = vpack.c.bf16 %v55_v27, %v54_v26 }
 0x13d   :  { %v85_v31 = vadd.f32 1e-05, %v83_v30  ;;  %v57_v30 = vld [vmem:[#allocation2 + $0xd8] sm:$0xff] }
 0x13f   :  { %826 = vrsqrt.f32 %v85_v31  ;;  %v815_v31 = vpack.c.bf16 %v57_v30, %v56_v28 }
 0x145   :  { %v825_v32 = vpop.eup %824 }
 0x146   :  { %v88_v34 = vmul.f32 %v825_v32, %v72_v6  ;;  %v792_v6 = vpack.c.bf16 %v39_v5, %v38_v4 }
 0x148   :  { %v94_v36 = vmul.f32 %v629_v33, %v88_v34  ;;  %793 = vmatprep.subr.bf16.mxu1 %v792_v6 }
 0x149   :  { %v827_v37 = vpop.eup %826 }
 0x14a   :  { %v89_v38 = vmul.f32 %v827_v37, %v73_v10  ;;  %v913_v39 = vadd.f32 %v630_v35, %v94_v36  ;;  %v42_v10 = vld [vmem:[#allocation2 + $0x60] sm:$0xff]  ;;  %v59_v37 = vld [vmem:[#allocation2 + $0xe8] sm:$0xff] }
 0x14b   :  { %v800_v12 = vpack.c.bf16 %v43_v11, %v42_v10 }
 0x14c   :  { %v95_v40 = vmul.f32 %v629_v33, %v89_v38  ;;  %690 = vmatprep.mubr.msk.f32.mxu0 %vm62_vm0, %v913_v39 }
 0x14e   :  { %v917_v41 = vadd.f32 %v630_v35, %v95_v40 }
 0x150   :  { %691 = vmatmul.mubr.msk.f32.vlgmr.msra.gmra.mrb[0].mxu0 %vm62_vm0, %v917_v41 }
 0x151   :  { %779 = vmatpush3.bf16.msra.mxu0 %v776_v50 }
 0x152   :  { %781 = vmatprep.subr.bf16.mxu0 %v780_v53 }
 0x155   :  { %783 = vmatpush3.bf16.msra.mxu0 %v780_v53 }
 0x156   :  { %785 = vmatprep.subr.bf16.mxu0 %v784_v57 }
 0x159   :  { %787 = vmatpush3.bf16.msra.mxu0 %v784_v57 }
 0x15a   :  { %789 = vmatprep.subr.bf16.mxu0 %v788_v59 }
 0x15d   :  { %791 = vmatpush3.bf16.msra.mxu0 %v788_v59 }
 0x15e   :  { %808 = vmatprep.subr.bf16.mxu0 %v867_v24 }
 0x223   :  { %v692_v42 = vpop.f32.mrb[0].mxu0 }
 0x224   :  { %v174_v43 = vpop.f32.mrb[1].mxu0 }
 0x225   :  { %701 = vmatprep.mubr.msk.f32.mxu1 %vm62_vm0, %v174_v43 }
 0x226   :  { %702 = vmatmul.mubr.msk.f32.vlgmr.msra.gmra.mrb[0].mxu1 %vm62_vm0, %v692_v42  ;;  %v640_v42 = vld [vmem:[#allocation2 + $0xe2] ss:$0 sm:$0xff] }
 0x227   :  { %795 = vmatpush3.bf16.msra.mxu1 %v792_v6 }
 0x228   :  { %797 = vmatprep.subr.bf16.mxu1 %v796_v9 }
 0x22b   :  { %799 = vmatpush3.bf16.msra.mxu1 %v796_v9 }
 0x22c   :  { %801 = vmatprep.subr.bf16.mxu1 %v800_v12 }
 0x22f   :  { %803 = vmatpush3.bf16.msra.mxu1 %v800_v12 }
 0x230   :  { %805 = vmatprep.subr.bf16.mxu1 %v804_v15 }
 0x233   :  { %807 = vmatpush3.bf16.msra.mxu1 %v804_v15 }
 0x234   :  { %811 = vmatprep.subr.bf16.mxu1 %v867_v24 }
 0x2f9   :  { %v703_v44 = vpop.f32.mrb[0].mxu1 }
 0x2fa   :  { %v255_v45 = vpop.f32.mrb[1].mxu1  ;;  %v268_v46 = vsel %vm264_vm1, %v703_v44, -inf }
 0x2fb   :  { %269 = vmax.xlane.f32.xlu1 %v268_v46  ;;  %v265_v47 = vsel %vm264_vm1, %v255_v45, -inf }
 0x2fc   :  { %266 = vmax.xlane.f32.xlu0 %v265_v47 }
 0x388   :  { %v270_v60 = vpop.xlane.xlu1 %269 }
 0x389   :  { %v272_v61 = vsub.f32 %v703_v44, %v270_v60  ;;  %v267_v62 = vpop.xlane.xlu0 %266  ;;  %v609_v44 = vld [vmem:[%s940_s2] sm:$0xff] }
 0x38a   :  { %v271_v63 = vsub.f32 %v255_v45, %v267_v62 }
 0x38b   :  { %v275_v0 = vmul.f32 1.442695, %v272_v61 }
 0x38c   :  { %v273_v1 = vmul.f32 1.442695, %v271_v63 }
 0x38e   :  { %828 = vpow2.f32 %v273_v1 }
 0x38f   :  { %830 = vpow2.f32 %v275_v0 }
 0x398   :  { %v829_v2 = vpop.eup %828 }
 0x399   :  { %v831_v3 = vpop.eup %830  ;;  %720 = vmatprep.mubr.msk.f32.mxu0 %vm264_vm1, %v829_v2 }
 0x39a   :  { %721 = vmatmul.mubr.msk.f32.vlgmr.msra.gmra.mrb[2].mxu0 %vm264_vm1, %v831_v3 }
 0x39b   :  { %746 = vmatprep.mubr.msk.f32.mxu0 %vm868_vm2, %v869_v25 }
 0x46d   :  { %v722_v16 = vpop.f32.mrb[2].mxu0 }
 0x46e   :  { %v359_v17 = vmax.f32 %v722_v16, 1e-30  ;;  %v349_v18 = vpop.f32.mrb[3].mxu0 }
 0x46f   :  { %v358_v19 = vmax.f32 %v349_v18, 1e-30 }
 0x470   :  { %832 = vrcp.f32 %v359_v17 }
 0x471   :  { %834 = vrcp.f32 %v358_v19 }
 0x47a   :  { %v833_v20 = vpop.eup %832 }
 0x47b   :  { %v835_v21 = vpop.eup %834  ;;  %v363_v23 = vmul.f32 %v833_v20, %v831_v3 }
 0x47c   :  { %v361_v22 = vmul.f32 %v835_v21, %v829_v2 }
 0x47e   :  { %739 = vmatprep.mubr.msk.f32.mxu1 %vm264_vm1, %v361_v22 }
 0x47f   :  { %740 = vmatmul.mubr.msk.f32.vlgmr.msra.gmra.mrb[2].mxu1 %vm264_vm1, %v363_v23 }
 0x480   :  { %757 = vmatprep.mubr.msk.f32.mxu1 %vm868_vm2, %v869_v25  ;;  %813 = vmatpush3.bf16.msra.mxu1 %v812_v29 }
 0x481   :  { %814 = vmatprep.subr.bf16.mxu1 %v867_v24 }
 0x484   :  { %816 = vmatpush3.bf16.msra.mxu1 %v815_v31 }
 0x552   :  { %v741_v32 = vpop.f32.mrb[2].mxu1 }
 0x553   :  { %v442_v33 = vadd.f32 %v741_v32, %v917_v41  ;;  %v436_v34 = vpop.f32.mrb[3].mxu1 }
 0x554   :  { %v437_v35 = vadd.f32 %v436_v34, %v913_v39 }
 0x556   :  { %v809_v36 = vpack.c.bf16 %v442_v33, %v437_v35 }
 0x558   :  { %810 = vmatpush3.bf16.msra.mxu0 %v809_v36 }
 0x55b   :  { %747 = vmatmul.mubr.msk.f32.vlgmr.msra.gmra.mrb[4].mxu0 %vm445_vm3, %v59_v37 }
 0x62e   :  { %v515_v38 = vpop.f32.mrb[4].mxu0 }
 0x62f   :  { %v748_v40 = vpop.f32.mrb[5].mxu0  ;;  %758 = vmatmul.mubr.msk.f32.vlgmr.msra.gmra.mrb[4].mxu1 %vm62_vm0, %v515_v38 }
 0x702   :  { %v592_v43 = vpop.f32.mrb[4].mxu1 }
 0x703   :  { %v593_v41 = vadd.f32 %v640_v42, %v592_v43  ;;  %v759_v45 = vpop.f32.mrb[5].mxu1 }
 0x705   :  { %v597_v46 = vsel %vm596_vm4, %v593_v41, -inf  ;;  %v610_v39 = vmul.f32 %v609_v44, %v593_v41 }
 0x706   :  { %598 = vmax.xlane.f32.xlu0 %v597_v46 }
 0x707   :  { %v611_v47 = vsel %vm596_vm4, %v610_v39, 0.0 }
 0x70a   :  { %612 = vadd.xlane.f32.xlu0 %v611_v47 }
 0x793   :  { %v599_v48 = vpop.xlane.xlu0 %598 }
 0x794   :  { %v600_v49 = vsub.f32 %v593_v41, %v599_v48 }
 0x796   :  { %v601_v50 = vmul.f32 1.442695, %v600_v49 }
 0x797   :  { %v613_v57 = vpop.xlane.xlu0 %612 }
 0x798   :  { %836 = vpow2.f32 %v601_v50 }
 0x7a2   :  { %v837_v51 = vpop.eup %836 }
 0x7a3   :  { %v603_v52 = vsel %vm596_vm4, %v837_v51, 0.0 }
 0x7a4   :  { %604 = vadd.xlane.f32.xlu1 %v603_v52 }
 0x7b5   :  { %616 = vrot.lane.b32.xlu1 %v593_v41, %s870_s30 }
 0x831   :  { %v605_v53 = vpop.xlane.xlu1 %604 }
 0x832   :  { %838 = vlog2.f32 %v605_v53 }
 0x835   :  { %v617_v59 = vpop.permute.xlu1 %616 }
 0x83c   :  { %v839_v54 = vpop.eup %838 }
 0x83d   :  { %v607_v55 = vmul.f32 0.6931472, %v839_v54 }
 0x83f   :  { %v608_v56 = vadd.f32 %v607_v55, %v599_v48 }
 0x841   :  { %v614_v58 = vsub.f32 %v608_v56, %v613_v57 }
 0x843   :  { %v620_v60 = vsel %vm619_vm5, %v614_v58, %v617_v59 }
 0x844   :  { %v622_v61 = vsel %vm621_vm6, %v620_v60, 0.0 }
 0x845   :  { %623 = vst [vmem:[%s941_s3] sm:$0xff] %v622_v61 }
 0x846   :  { %628 = vsyncpa [#allocation3], 1 }

</bundles_post_ra>
